<compile_context>
chip_gen: v5e
topology: v5e:2x2
jax: 0.10.0
libtpu: 0.0.40
codegen_flags: <defaults>
</compile_context>

<pallas_src>
import functools

import jax
import jax.numpy as jnp
from jax.experimental import pallas as pl
from jax.experimental.pallas import tpu as pltpu


_VMEM_LIMIT_BYTES = 48 * 1024 * 1024   # explicit scoped-VMEM limit; fits v5e/v6e/v7x
_TILE_VMEM_BUDGET = 24 * 1024 * 1024   # double-buffered per-step working-set budget


def _round_up(x, m):
    return (x + m - 1) // m * m


# ----------------------------------------------------------------------------
# Pallas kernels
# ----------------------------------------------------------------------------

def _mm_bias_kernel(a_ref, b_ref, bias_ref, o_ref, *, apply_relu):
    """o = act((A @ B) + bias); bf16 operands, f32 MXU accumulation."""
    y = jnp.dot(a_ref[...], b_ref[...], preferred_element_type=jnp.float32)
    y = y + bias_ref[...]
    if apply_relu:
        y = jnp.maximum(y, 0.0)
    o_ref[...] = y.astype(o_ref.dtype)


def _mm_bias_residual_kernel(a_ref, b_ref, bias_ref, id_ref, o_ref):
    """o = relu((A @ B) + bias + identity) -- fused bottleneck tail (conv3 + skip + ReLU)."""
    y = jnp.dot(a_ref[...], b_ref[...], preferred_element_type=jnp.float32)
    y = y + bias_ref[...] + id_ref[...].astype(jnp.float32)
    o_ref[...] = jnp.maximum(y, 0.0).astype(o_ref.dtype)


def _conv3x3_s1_kernel(x_ref, w_ref, b_ref, o_ref, *, ho, wo, apply_relu):
    """Direct 3x3 stride-1 conv on one (padded) image: 9 shifted dots, f32 accumulate.

    x_ref: (1, Hp, Wp, C) padded NHWC slab, w_ref: (9, C, tn) tap-major folded weights,
    b_ref: (1, tn), o_ref: (1, Ho*Wo, tn).
    """
    c = x_ref.shape[-1]
    x = x_ref[0]                                    # (Hp, Wp, C)
    acc = jnp.zeros((ho * wo, o_ref.shape[-1]), jnp.float32)
    for tap in range(9):                            # static unroll over the 3x3 taps
        di, dj = tap // 3, tap % 3
        xs = x[di:di + ho, dj:dj + wo, :].reshape(ho * wo, c)
        acc = acc + jnp.dot(xs, w_ref[tap], preferred_element_type=jnp.float32)
    acc = acc + b_ref[...]
    if apply_relu:
        acc = jnp.maximum(acc, 0.0)
    o_ref[0] = acc.astype(o_ref.dtype)


# ----------------------------------------------------------------------------
# Tiling policy + fused-matmul wrapper
# ----------------------------------------------------------------------------

def _choose_tiles(M, K, N, n_mn_operands):
    """Pick (tm, tn). N is a multiple of 128 by construction (weights are column-padded)."""
    tn = 256 if N % 256 == 0 else 128
    m8 = _round_up(max(M, 1), 8)
    if m8 <= 128:
        return m8, tn                               # tiny M: one row-tile, minimal padding
    for tm in (1024, 512, 256, 128):                # prefer big tm: fewer weight re-streams
        if tm > m8:
            continue
        waste = _round_up(M, tm) - M
        # double-buffered bf16 A + B + (out [+ identity]) per grid step
        step_bytes = 2 * 2 * (tm * K + K * tn + n_mn_operands * tm * tn)
        if step_bytes <= _TILE_VMEM_BUDGET and waste <= max(M // 4, 127):
            return tm, tn
    return 128, tn


def fused_matmul(a, b, bias, *, relu, identity=None, out_dtype=jnp.bfloat16):
    """act((a @ b) + bias [+ identity]) with a single-K-step tiled Pallas TPU kernel.

    a: (M, K) activations (cast to bf16 here), b: (K, N) pre-packed bf16 weights with BN
    scale folded in (N a multiple of 128), bias: (1, N) f32, identity: optional (M, N).
    M is padded up to the row tile; the padded junk rows are sliced off afterwards.
    """
    M, K = a.shape
    Kb, N = b.shape
    assert K == Kb and N % 128 == 0, (K, Kb, N)
    n_mn = 3 if identity is not None else 2
    tm, tn = _choose_tiles(M, K, N, n_mn)
    Mp = _round_up(M, tm)

    a = a.astype(jnp.bfloat16)
    if Mp != M:
        a = jnp.pad(a, ((0, Mp - M), (0, 0)))

    in_specs = [
        pl.BlockSpec((tm, K), lambda i, j: (i, 0)),   # activations; A block held across j
        pl.BlockSpec((K, tn), lambda i, j: (0, j)),   # bf16 weights (streamed)
        pl.BlockSpec((1, tn), lambda i, j: (0, j)),   # folded BN / linear bias
    ]
    args = [a, b, bias]
    if identity is None:
        kernel = functools.partial(_mm_bias_kernel, apply_relu=relu)
    else:
        kernel = _mm_bias_residual_kernel
        ident = identity.astype(jnp.bfloat16)
        if Mp != M:
            ident = jnp.pad(ident, ((0, Mp - M), (0, 0)))
        in_specs.append(pl.BlockSpec((tm, tn), lambda i, j: (i, j)))
        args.append(ident)

    out = pl.pallas_call(
        kernel,
        out_shape=jax.ShapeDtypeStruct((Mp, N), out_dtype),
        grid_spec=pltpu.PrefetchScalarGridSpec(
            num_scalar_prefetch=0,
            grid=(Mp // tm, N // tn),
            in_specs=in_specs,
            out_specs=pl.BlockSpec((tm, tn), lambda i, j: (i, j)),
        ),
        compiler_params=pltpu.CompilerParams(
            dimension_semantics=("parallel", "parallel"),
            vmem_limit_bytes=_VMEM_LIMIT_BYTES),
    )(*args)
    return out if Mp == M else out[:M]


# ----------------------------------------------------------------------------
# Direct 3x3 stride-1 conv wrapper (no HBM im2col)
# ----------------------------------------------------------------------------

def conv3x3_s1_direct(x, p, relu):
    """x: (B, H, W, Cin_pad) NHWC; 3x3, stride 1, pad 1; returns (B, H, W, Cout_pad)."""
    B, H, W, C = x.shape
    cout = p["w_mat"].shape[1]
    w_taps = p["w_mat"].reshape(9, C, cout)           # contiguous view of the packed weights
    xp = jnp.pad(x.astype(jnp.bfloat16), ((0, 0), (1, 1), (1, 1), (0, 0)))
    Hp, Wp = H + 2, W + 2
    tn = 256 if cout % 256 == 0 else 128
    grid = (B, cout // tn)

    out = pl.pallas_call(
        functools.partial(_conv3x3_s1_kernel, ho=H, wo=W, apply_relu=relu),
        out_shape=jax.ShapeDtypeStruct((B, H * W, cout), jnp.bfloat16),
        grid_spec=pltpu.PrefetchScalarGridSpec(
            num_scalar_prefetch=0,
            grid=grid,
            in_specs=[
                pl.BlockSpec((1, Hp, Wp, C), lambda b, j: (b, 0, 0, 0)),  # held across j
                pl.BlockSpec((9, C, tn), lambda b, j: (0, 0, j)),
                pl.BlockSpec((1, tn), lambda b, j: (0, j)),
            ],
            out_specs=pl.BlockSpec((1, H * W, tn), lambda b, j: (b, 0, j)),
        ),
        compiler_params=pltpu.CompilerParams(
            dimension_semantics=("parallel", "parallel"),
            vmem_limit_bytes=_VMEM_LIMIT_BYTES),
    )(xp, w_taps, p["bias"])
    return out.reshape(B, H, W, cout)


# ----------------------------------------------------------------------------
# Conv / pooling glue (layout plumbing only; the matmul hot path is in Pallas)
# ----------------------------------------------------------------------------

def _im2col(x, kh, kw, stride, pad):
    """x: (B,H,W,C) NHWC -> patches (B*Ho*Wo, kh*kw*C), K ordered (kh, kw, Cin)."""
    B, H, W, C = x.shape
    if kh == 1 and kw == 1 and pad == 0:
        if stride > 1:
            x = x[:, ::stride, ::stride, :]
        _, Ho, Wo, _ = x.shape
        return x.reshape(B * Ho * Wo, C), (B, Ho, Wo)
    # TODO(synk): only the 7x7 stem and three stride-2 3x3 convs reach this branch now.
    if pad > 0:
        x = jnp.pad(x, ((0, 0), (pad, pad), (pad, pad), (0, 0)))
    Hp, Wp = H + 2 * pad, W + 2 * pad
    Ho = (Hp - kh) // stride + 1
    Wo = (Wp - kw) // stride + 1
    cols = []
    for i in range(kh):
        for j in range(kw):
            cols.append(x[:, i:i + stride * (Ho - 1) + 1:stride,
                            j:j + stride * (Wo - 1) + 1:stride, :])
    patches = jnp.stack(cols, axis=3)                 # (B, Ho, Wo, kh*kw, C)
    return patches.reshape(B * Ho * Wo, kh * kw * C), (B, Ho, Wo)


def conv_bn_act(x, p, relu, identity=None):
    if p["kh"] == 3 and p["stride"] == 1 and p["pad"] == 1 and identity is None:
        return conv3x3_s1_direct(x, p, relu)          # no HBM im2col for bottleneck conv2
    patches, (B, Ho, Wo) = _im2col(x, p["kh"], p["kw"], p["stride"], p["pad"])
    id_flat = identity.reshape(B * Ho * Wo, -1) if identity is not None else None
    y = fused_matmul(patches, p["w_mat"], p["bias"], relu=relu, identity=id_flat)
    return y.reshape(B, Ho, Wo, -1)


def maxpool_3x3_s2_p1(x):
    init = jnp.array(-jnp.inf, dtype=x.dtype)
    return jax.lax.reduce_window(
        x, init, jax.lax.max,
        window_dimensions=(1, 3, 3, 1),
        window_strides=(1, 2, 2, 1),
        padding=((0, 0), (1, 1), (1, 1), (0, 0)))


# ----------------------------------------------------------------------------
# Deterministic parameter construction (ResNet-50 + two task heads), pre-packed
# ----------------------------------------------------------------------------

class _KeyGen:
    def __init__(self, seed):
        self._key = jax.random.PRNGKey(seed)

    def __call__(self):
        self._key, k = jax.random.split(self._key)
        return k


def _make_conv_bn(kg, cin, cout, k, stride, pad, *, pad_cin=True):
    """Conv(OIHW) + eval-mode BN folded, packed to (kh*kw*cin_pad, cout_pad) bf16.

    Channel counts are zero-padded up to multiples of 128 so every output is lane-dense;
    padded columns get zero weight AND zero bias -> padded channels are exactly 0.
    """
    cin_p = _round_up(cin, 128) if pad_cin else cin
    cout_p = _round_up(cout, 128)
    w = 0.05 * jax.random.normal(kg(), (cout, cin, k, k), jnp.float32)
    gamma = 1.0 + 0.02 * jax.random.normal(kg(), (cout,), jnp.float32)
    beta = 0.02 * jax.random.normal(kg(), (cout,), jnp.float32)
    mean = 0.02 * jax.random.normal(kg(), (cout,), jnp.float32)
    var = 1.0 + 0.1 * jax.random.uniform(kg(), (cout,), jnp.float32)
    eps = 1e-5
    scale = gamma / jnp.sqrt(var + eps)               # folded eval-mode BatchNorm
    bias = beta - mean * scale
    w4 = jnp.transpose(w, (2, 3, 1, 0)) * scale[None, None, None, :]     # (k,k,cin,cout)
    w4 = jnp.pad(w4, ((0, 0), (0, 0), (0, cin_p - cin), (0, cout_p - cout)))
    w_mat = w4.reshape(k * k * cin_p, cout_p).astype(jnp.bfloat16)
    bias_p = jnp.pad(bias, (0, cout_p - cout)).reshape(1, cout_p).astype(jnp.float32)
    return dict(w_mat=w_mat, bias=bias_p, kh=k, kw=k, stride=stride, pad=pad)


def make_multitask_resnet50_params(seed=0):
    kg = _KeyGen(seed)
    params = {"conv1": _make_conv_bn(kg, 3, 64, 7, 2, 3, pad_cin=False)}   # stem keeps cin=3
    layer_cfg = [(64, 3, 1), (128, 4, 2), (256, 6, 2), (512, 3, 2)]        # ResNet-50
    inplanes = 64
    layers = []
    for planes, nblocks, stride in layer_cfg:
        blocks = []
        for b in range(nblocks):
            s = stride if b == 0 else 1
            blk = dict(
                conv1=_make_conv_bn(kg, inplanes, planes, 1, 1, 0),
                conv2=_make_conv_bn(kg, planes, planes, 3, s, 1),
                conv3=_make_conv_bn(kg, planes, planes * 4, 1, 1, 0),
            )
            if s != 1 or inplanes != planes * 4:
                blk["downsample"] = _make_conv_bn(kg, inplanes, planes * 4, 1, s, 0)
            blocks.append(blk)
            inplanes = planes * 4
        layers.append(blocks)
    params["layers"] = layers

    # Fuse the two task heads into one matmul, column-padded 20 -> 128 for lane-dense stores.
    def _make_linear(cin, cout):
        w = 0.05 * jax.random.normal(kg(), (cout, cin), jnp.float32)       # PyTorch (out, in)
        b = 0.02 * jax.random.normal(kg(), (cout,), jnp.float32)
        return w, b

    w1, b1 = _make_linear(2048, 10)
    w2, b2 = _make_linear(2048, 10)
    w_cat = jnp.concatenate([jnp.transpose(w1), jnp.transpose(w2)], axis=1)   # (2048, 20)
    n_pad = 128 - w_cat.shape[1]
    params["heads"] = dict(
        w_mat=jnp.pad(w_cat, ((0, 0), (0, n_pad))).astype(jnp.bfloat16),
        bias=jnp.pad(jnp.concatenate([b1, b2]), (0, n_pad)).reshape(1, 128).astype(jnp.float32))
    return params


# ----------------------------------------------------------------------------
# Forward pass (mirrors MultiTaskResNet.forward)
# ----------------------------------------------------------------------------

def multi_task_resnet_forward(params, x_nchw):
    x = jnp.transpose(x_nchw, (0, 2, 3, 1)).astype(jnp.bfloat16)   # NCHW -> NHWC, bf16
    x = conv_bn_act(x, params["conv1"], relu=True)
    x = maxpool_3x3_s2_p1(x)
    for blocks in params["layers"]:
        for blk in blocks:
            out = conv_bn_act(x, blk["conv1"], relu=True)
            out = conv_bn_act(out, blk["conv2"], relu=True)
            identity = (conv_bn_act(x, blk["downsample"], relu=False)
                        if "downsample" in blk else x)
            # conv3 + BN + residual add + ReLU, all fused in one Pallas kernel epilogue.
            x = conv_bn_act(out, blk["conv3"], relu=True, identity=identity)
    feat = jnp.mean(x.astype(jnp.float32), axis=(1, 2))            # adaptive avgpool -> (B, 2048)
    h = params["heads"]
    logits = fused_matmul(feat, h["w_mat"], h["bias"], relu=False, out_dtype=jnp.float32)
    return logits[:, :10], logits[:, 10:20]


if __name__ == "__main__":
    params = make_multitask_resnet50_params(seed=0)
    x = jax.random.normal(jax.random.PRNGKey(0), (2, 3, 32, 32), jnp.float32)  # NCHW
    t1, t2 = multi_task_resnet_forward(params, x)
    jax.block_until_ready((t1, t2))
    assert t1.shape == (2, 10) and t2.shape == (2, 10)
    assert jnp.isfinite(t1).all() and jnp.isfinite(t2).all()
    print("KERNEL_OK")
</pallas_src>

<mosaic_0001>
module attributes {stable_mosaic.version = 11 : i64} {
  func.func @_mm_bias_kernel(%arg0: i32, %arg1: i32, %arg2: memref<512x147xbf16, #tpu.memory_space<vmem>>, %arg3: memref<147x128xbf16, #tpu.memory_space<vmem>>, %arg4: memref<1x128xf32, #tpu.memory_space<vmem>>, %arg5: memref<512x128xbf16, #tpu.memory_space<vmem>>) attributes {dimension_semantics = [#tpu.dimension_semantics<parallel>, #tpu.dimension_semantics<parallel>], iteration_bounds = array<i64: 1, 1>, scalar_prefetch = 0 : i64, scratch_operands = 0 : i64, tpu.core_type = #tpu.core_type<tc>, window_params = [{transform_indices = @transform_0, window_bounds = array<i64: 512, 147>}, {transform_indices = @transform_1, window_bounds = array<i64: 147, 128>}, {transform_indices = @transform_2, window_bounds = array<i64: 1, 128>}, {transform_indices = @transform_3, window_bounds = array<i64: 512, 128>}]} {
    %c0 = arith.constant 0 : index
    %c0_0 = arith.constant 0 : index
    %0 = vector.load %arg2[%c0, %c0_0] : memref<512x147xbf16, #tpu.memory_space<vmem>>, vector<512x147xbf16>
    %c0_1 = arith.constant 0 : index
    %c0_2 = arith.constant 0 : index
    %1 = vector.load %arg3[%c0_1, %c0_2] : memref<147x128xbf16, #tpu.memory_space<vmem>>, vector<147x128xbf16>
    %cst = arith.constant dense<0.000000e+00> : vector<512x128xf32>
    %2 = tpu.matmul %0, %1, %cst {dimension_numbers = #tpu.dot_dimension_numbers<[1], [0], [0], [1], [0, 0, 1, 1], [], []>} : vector<512x147xbf16>, vector<147x128xbf16>, vector<512x128xf32> -> vector<512x128xf32>
    %c0_3 = arith.constant 0 : index
    %c0_4 = arith.constant 0 : index
    %3 = vector.load %arg4[%c0_3, %c0_4] : memref<1x128xf32, #tpu.memory_space<vmem>>, vector<1x128xf32>
    %4 = vector.broadcast %3 : vector<1x128xf32> to vector<512x128xf32>
    %5 = arith.addf %2, %4 : vector<512x128xf32>
    %cst_5 = arith.constant 0.000000e+00 : f32
    %6 = vector.broadcast %cst_5 : f32 to vector<512x128xf32>
    %7 = arith.maximumf %5, %6 : vector<512x128xf32>
    %8 = arith.truncf %7 : vector<512x128xf32> to vector<512x128xbf16>
    %c0_6 = arith.constant 0 : index
    %c0_7 = arith.constant 0 : index
    %9 = vector.load %arg5[%c0_6, %c0_7] : memref<512x128xbf16, #tpu.memory_space<vmem>>, vector<512x128xbf16>
    tpu.vector_store %arg5[%c0_6, %c0_7], %8 {strides = array<i32>} : memref<512x128xbf16, #tpu.memory_space<vmem>>, vector<512x128xbf16>,
    return
  }
  func.func @transform_0(%arg0: i32, %arg1: i32) -> (i32, i32) {
    %c0_i32 = arith.constant 0 : i32
    %c0_i32_0 = arith.constant 0 : i32
    return %arg0, %c0_i32 : i32, i32
  }
  func.func @transform_1(%arg0: i32, %arg1: i32) -> (i32, i32) {
    %c0_i32 = arith.constant 0 : i32
    %c0_i32_0 = arith.constant 0 : i32
    return %c0_i32, %arg1 : i32, i32
  }
  func.func @transform_2(%arg0: i32, %arg1: i32) -> (i32, i32) {
    %c0_i32 = arith.constant 0 : i32
    %c0_i32_0 = arith.constant 0 : i32
    return %c0_i32, %arg1 : i32, i32
  }
  func.func @transform_3(%arg0: i32, %arg1: i32) -> (i32, i32) {
    %c0_i32 = arith.constant 0 : i32
    return %arg0, %arg1 : i32, i32
  }
}

</mosaic_0001>

<bundles_post_ra>
// kernel: tpu_custom_call.1
= control target key start
LH: loop header
LB: loop body
LE: loop exit
PB: predicated region body
PF: predicated region fallthrough
CT: control target
= control target key end

     0   :  { %vm545_vm0 = vcmask 1040384   ;;  %vm546_vm1 = vcmask 1041408   ;;  %v1729_v4 = vmov 65535   ;;  %s2328_s0 = inlined_call_operand.vmem [shape: bf16[512,147], index: 0, kind: input, shape index: {}]   ;;  %s2329_s1 = inlined_call_operand.vmem [shape: bf16[147,128], index: 1, kind: input, shape index: {}]   ;;  %s2330_s2 = inlined_call_operand.vmem [shape: f32[1,128], index: 2, kind: input, shape index: {}]   ;;  %s2331_s3 = inlined_call_operand.hbm [shape: bf16[512,128], index: 3, kind: output, shape index: {}]  }
   0x1   :  { %v1495_v0 = vld [vmem:[%s2329_s1 + $0x38] sm:$0xff]  ;;  %v98_v1 = vld [vmem:[%s2329_s1 + $0x48] sm:$0x3]  ;;  %v1494_v3 = vld [vmem:[%s2329_s1 + $0x30] sm:$0xff]  ;;  %v547_v5 = vsel %vm545_vm0, 4294967295, %v1729_v4 }
   0x2   :  { %v428_v2 = vunpack.c.l.b16 %v98_v1  ;;  %552 = vmatpush.bf16.msra.mxu0 %v1495_v0  ;;  %1688 = vmatpush.bf16.msra.mxu2 %v1495_v0  ;;  %v548_v7 = vsel %vm546_vm1, %v547_v5, 0  ;;  %v1493_v9 = vld [vmem:[%s2329_s1 + $0x28] sm:$0xff]  ;;  %v1496_v10 = vld [vmem:[%s2329_s1 + $0x40] sm:$0xff] }
   0x3   :  { %v1424_v11 = vld [vmem:[%s2328_s0 + $0x4] sm:$0xf]  ;;  %v1104_v12 = vld [vmem:[%s2328_s0 + $0x8] sm:$0xf0] }
   0x4   :  { %v438_v6 = vpack.c.b16 %v428_v2, %v428_v2 }
   0x6   :  { %v550_v8 = vand.u32 %v548_v7, %v438_v6  ;;  %553 = vmatpush.bf16.msra.mxu0 %v1494_v3  ;;  %1689 = vmatpush.bf16.msra.mxu2 %v1494_v3 }
   0x8   :  { %727 = vmatpush.bf16.msra.mxu1 %v550_v8  ;;  %1696 = vmatpush.bf16.msra.mxu3 %v550_v8 }
   0x9   :  { %8 = vsyncpa [#allocation3], 0  ;;  %v1458_v13 = vld [vmem:[%s2328_s0 + $0x114] sm:$0xf]  ;;  %v1240_v14 = vld [vmem:[%s2328_s0 + $0x118] sm:$0xf0]  ;;  %v1107_v15 = vor.u32 %v1424_v11, %v1104_v12 }
   0xa   :  { %554 = vmatpush.bf16.msra.mxu0 %v1493_v9  ;;  %1690 = vmatpush.bf16.msra.mxu2 %v1493_v9  ;;  %v1492_v16 = vld [vmem:[%s2329_s1 + $0x20] sm:$0xff]  ;;  %vm448_vm2 = vcmask 154624   ;;  %v1243_v17 = vor.u32 %v1458_v13, %v1240_v14  ;;  %v1491_v18 = vld [vmem:[%s2329_s1 + $0x18] sm:$0xff]  ;;  %v1490_v19 = vld [vmem:[%s2329_s1 + $0x10] sm:$0xff]  ;;  %s1088_s10 = sshll.u32 %s2331_s3, 4  ;;  %s1731_s11 = smov 64   ;;  %s1089_s10 = int_to_ptr.hbm [resolvable:$true] %s1088_s10 }
   0xb   :  { %v1489_v20 = vld [vmem:[%s2329_s1 + $0x8] sm:$0xff]  ;;  %v1426_v21 = vld [vmem:[%s2328_s0 + $0x14] sm:$0xf]  ;;  %v1112_v22 = vld [vmem:[%s2328_s0 + $0x18] sm:$0xf0]  ;;  %s1732_s12 = smov 4  }
   0xc   :  { %728 = vmatpush.bf16.msra.mxu1 %v1496_v10  ;;  %1697 = vmatpush.bf16.msra.mxu3 %v1496_v10  ;;  %v1460_v23 = vld [vmem:[%s2328_s0 + $0x124] sm:$0xf]  ;;  %v1248_v24 = vld [vmem:[%s2328_s0 + $0x128] sm:$0xf0]  ;;  %v1115_v25 = vor.u32 %v1426_v21, %v1112_v22  ;;  %v1102_v27 = vld [vmem:[%s2328_s0] sm:$0xf] }
   0xd   :  { %v1488_v26 = vld [vmem:[%s2329_s1] sm:$0xff]  ;;  %v1425_v28 = vld [vmem:[%s2328_s0 + $0x4] sm:$0xf0]  ;;  %v1251_v31 = vor.u32 %v1460_v23, %v1248_v24  ;;  %v1120_v35 = vld [vmem:[%s2328_s0 + $0x28] sm:$0xf0] }
   0xe   :  { %555 = vmatpush.bf16.msra.mxu0 %v1492_v16  ;;  %1691 = vmatpush.bf16.msra.mxu2 %v1492_v16  ;;  %v1230_v29 = vld [vmem:[%s2328_s0 + $0x100] sm:$0xf]  ;;  %v1457_v30 = vld [vmem:[%s2328_s0 + $0x104] sm:$0xf0]  ;;  %v1103_v32 = vor.u32 %v1425_v28, %v1102_v27  ;;  %v1428_v34 = vld [vmem:[%s2328_s0 + $0x24] sm:$0xf] }
   0xf   :  { %1392 = vmatmul.msk.bf16.vlgmr.msra.gmra.mxu1 %vm448_vm2, %v1107_v15  ;;  %1409 = vmatmul.msk.bf16.vlgmr.msra.gmra.mxu3 %vm448_vm2, %v1243_v17  ;;  %v1231_v33 = vor.u32 %v1457_v30, %v1230_v29  ;;  %v1462_v36 = vld [vmem:[%s2328_s0 + $0x134] sm:$0xf]  ;;  %v1256_v37 = vld [vmem:[%s2328_s0 + $0x138] sm:$0xf0]  ;;  %v1123_v38 = vor.u32 %v1428_v34, %v1120_v35  ;;  %v1110_v39 = vld [vmem:[%s2328_s0 + $0x10] sm:$0xf] }
  0x10   :  { %v1427_v40 = vld [vmem:[%s2328_s0 + $0x14] sm:$0xf0]  ;;  %v1238_v41 = vld [vmem:[%s2328_s0 + $0x110] sm:$0xf]  ;;  %v1259_v43 = vor.u32 %v1462_v36, %v1256_v37  ;;  %v1430_v46 = vld [vmem:[%s2328_s0 + $0x34] sm:$0xf] }
  0x11   :  { %v1459_v42 = vld [vmem:[%s2328_s0 + $0x114] sm:$0xf0]  ;;  %v1111_v44 = vor.u32 %v1427_v40, %v1110_v39  ;;  %v1128_v47 = vld [vmem:[%s2328_s0 + $0x38] sm:$0xf0]  ;;  %v1464_v48 = vld [vmem:[%s2328_s0 + $0x144] sm:$0xf] }
  0x12   :  { %556 = vmatpush.bf16.msra.mxu0 %v1491_v18  ;;  %1692 = vmatpush.bf16.msra.mxu2 %v1491_v18  ;;  %v1239_v45 = vor.u32 %v1459_v42, %v1238_v41  ;;  %v1264_v49 = vld [vmem:[%s2328_s0 + $0x148] sm:$0xf0]  ;;  %v1131_v50 = vor.u32 %v1430_v46, %v1128_v47  ;;  %v1118_v51 = vld [vmem:[%s2328_s0 + $0x20] sm:$0xf]  ;;  %v1429_v52 = vld [vmem:[%s2328_s0 + $0x24] sm:$0xf0] }
  0x13   :  { %v1246_v53 = vld [vmem:[%s2328_s0 + $0x120] sm:$0xf]  ;;  %v1461_v54 = vld [vmem:[%s2328_s0 + $0x124] sm:$0xf0]  ;;  %v1267_v55 = vor.u32 %v1464_v48, %v1264_v49  ;;  %v1119_v56 = vor.u32 %v1429_v52, %v1118_v51  ;;  %v1432_v58 = vld [vmem:[%s2328_s0 + $0x44] sm:$0xf] }
  0x14   :  { %v1247_v57 = vor.u32 %v1461_v54, %v1246_v53  ;;  %v1136_v59 = vld [vmem:[%s2328_s0 + $0x48] sm:$0xf0]  ;;  %v1466_v60 = vld [vmem:[%s2328_s0 + $0x154] sm:$0xf]  ;;  %v1272_v61 = vld [vmem:[%s2328_s0 + $0x158] sm:$0xf0] }
  0x15   :  { %v1139_v62 = vor.u32 %v1432_v58, %v1136_v59  ;;  %v1126_v63 = vld [vmem:[%s2328_s0 + $0x30] sm:$0xf]  ;;  %v1431_v0 = vld [vmem:[%s2328_s0 + $0x34] sm:$0xf0]  ;;  %v1275_v3 = vor.u32 %v1466_v60, %v1272_v61  ;;  %v1434_v6 = vld [vmem:[%s2328_s0 + $0x54] sm:$0xf] }
  0x16   :  { %557 = vmatpush.bf16.msra.mxu0 %v1490_v19  ;;  %1693 = vmatpush.bf16.msra.mxu2 %v1490_v19  ;;  %v1254_v1 = vld [vmem:[%s2328_s0 + $0x130] sm:$0xf]  ;;  %v1463_v2 = vld [vmem:[%s2328_s0 + $0x134] sm:$0xf0]  ;;  %v1127_v4 = vor.u32 %v1431_v0, %v1126_v63  ;;  %v1144_v7 = vld [vmem:[%s2328_s0 + $0x58] sm:$0xf0] }
  0x17   :  { %v1255_v5 = vor.u32 %v1463_v2, %v1254_v1  ;;  %v1468_v8 = vld [vmem:[%s2328_s0 + $0x164] sm:$0xf]  ;;  %v1280_v9 = vld [vmem:[%s2328_s0 + $0x168] sm:$0xf0]  ;;  %v1147_v10 = vor.u32 %v1434_v6, %v1144_v7  ;;  %v1134_v11 = vld [vmem:[%s2328_s0 + $0x40] sm:$0xf] }
  0x18   :  { %v1433_v12 = vld [vmem:[%s2328_s0 + $0x44] sm:$0xf0]  ;;  %v1262_v13 = vld [vmem:[%s2328_s0 + $0x140] sm:$0xf]  ;;  %v1283_v15 = vor.u32 %v1468_v8, %v1280_v9  ;;  %v1436_v18 = vld [vmem:[%s2328_s0 + $0x64] sm:$0xf] }
  0x19   :  { %v1465_v14 = vld [vmem:[%s2328_s0 + $0x144] sm:$0xf0]  ;;  %v1135_v16 = vor.u32 %v1433_v12, %v1134_v11  ;;  %v1152_v19 = vld [vmem:[%s2328_s0 + $0x68] sm:$0xf0]  ;;  %v1288_v21 = vld [vmem:[%s2328_s0 + $0x178] sm:$0xf0] }
  0x1a   :  { %558 = vmatpush.bf16.msra.mxu0 %v1489_v20  ;;  %1694 = vmatpush.bf16.msra.mxu2 %v1489_v20  ;;  %v1263_v17 = vor.u32 %v1465_v14, %v1262_v13  ;;  %v1470_v20 = vld [vmem:[%s2328_s0 + $0x174] sm:$0xf]  ;;  %v1155_v22 = vor.u32 %v1436_v18, %v1152_v19  ;;  %v1142_v23 = vld [vmem:[%s2328_s0 + $0x50] sm:$0xf]  ;;  %v1435_v24 = vld [vmem:[%s2328_s0 + $0x54] sm:$0xf0] }
  0x1b   :  { %v1291_v27 = vor.u32 %v1470_v20, %v1288_v21  ;;  %v1143_v28 = vor.u32 %v1435_v24, %v1142_v23  ;;  %v1438_v30 = vld [vmem:[%s2328_s0 + $0x74] sm:$0xf]  ;;  %v1150_v35 = vld [vmem:[%s2328_s0 + $0x60] sm:$0xf]  ;;  %v1437_v36 = vld [vmem:[%s2328_s0 + $0x64] sm:$0xf0] }
  0x1c   :  { %v1278_v37 = vld [vmem:[%s2328_s0 + $0x160] sm:$0xf]  ;;  %v1151_v40 = vor.u32 %v1437_v36, %v1150_v35  ;;  %v1440_v42 = vld [vmem:[%s2328_s0 + $0x84] sm:$0xf]  ;;  %v1158_v47 = vld [vmem:[%s2328_s0 + $0x70] sm:$0xf] }
  0x1d   :  { %v1439_v48 = vld [vmem:[%s2328_s0 + $0x74] sm:$0xf0]  ;;  %v1176_v58 = vld [vmem:[%s2328_s0 + $0x98] sm:$0xf0]  ;;  %v1476_v59 = vld [vmem:[%s2328_s0 + $0x1a4] sm:$0xf] }
  0x1e   :  { %559 = vmatpush.bf16.msra.mxu0 %v1488_v26  ;;  %1695 = vmatpush.bf16.msra.mxu2 %v1488_v26  ;;  %v1467_v26 = vld [vmem:[%s2328_s0 + $0x154] sm:$0xf0]  ;;  %v1159_v53 = vor.u32 %v1439_v48, %v1158_v47  ;;  %v1312_v60 = vld [vmem:[%s2328_s0 + $0x1a8] sm:$0xf0]  ;;  %v1441_v63 = vld [vmem:[%s2328_s0 + $0x84] sm:$0xf0] }
  0x1f   :  { %1393 = vmatmul.msk.bf16.gmra.mxu1 %vm448_vm2, %v1115_v25  ;;  %1410 = vmatmul.msk.bf16.gmra.mxu3 %vm448_vm2, %v1251_v31  ;;  %v1270_v25 = vld [vmem:[%s2328_s0 + $0x150] sm:$0xf]  ;;  %v1160_v31 = vld [vmem:[%s2328_s0 + $0x78] sm:$0xf0]  ;;  %v1471_v51 = vld [vmem:[%s2328_s0 + $0x174] sm:$0xf0] }
  0x20   :  { %v1271_v29 = vor.u32 %v1467_v26, %v1270_v25  ;;  %v1163_v34 = vor.u32 %v1438_v30, %v1160_v31  ;;  %v1294_v2 = vld [vmem:[%s2328_s0 + $0x180] sm:$0xf]  ;;  %v1478_v19 = vld [vmem:[%s2328_s0 + $0x1b4] sm:$0xf]  ;;  %v1320_v20 = vld [vmem:[%s2328_s0 + $0x1b8] sm:$0xf0] }
  0x21   :  { %560 = vmatmul.bf16.vlgmr.msra.gmra.mxu0 %v1103_v32  ;;  %640 = vmatmul.bf16.vlgmr.msra.gmra.mxu2 %v1231_v33  ;;  %v1472_v32 = vld [vmem:[%s2328_s0 + $0x184] sm:$0xf]  ;;  %v1296_v33 = vld [vmem:[%s2328_s0 + $0x188] sm:$0xf0]  ;;  %v2037_v8 = vld [vmem:[%s2330_s2] ss:$0 sm:$0xff]  ;;  %v1323_v30 = vor.u32 %v1478_v19, %v1320_v20 }
  0x22   :  { %v1299_v39 = vor.u32 %v1472_v32, %v1296_v33  ;;  %v1443_v23 = vld [vmem:[%s2328_s0 + $0x94] sm:$0xf0]  ;;  %v1328_v47 = vld [vmem:[%s2328_s0 + $0x1c8] sm:$0xf0]  ;;  %v1482_v19 = vld [vmem:[%s2328_s0 + $0x1d4] sm:$0xf] }
  0x23   :  { %v1336_v20 = vld [vmem:[%s2328_s0 + $0x1d8] sm:$0xf0] }
  0x2f   :  { %1394 = vmatmul.msk.bf16.gmra.mxu1 %vm448_vm2, %v1123_v38  ;;  %1411 = vmatmul.msk.bf16.gmra.mxu3 %vm448_vm2, %v1259_v43  ;;  %v1469_v38 = vld [vmem:[%s2328_s0 + $0x164] sm:$0xf0]  ;;  %v1168_v43 = vld [vmem:[%s2328_s0 + $0x88] sm:$0xf0] }
  0x30   :  { %v1279_v41 = vor.u32 %v1469_v38, %v1278_v37  ;;  %v1171_v46 = vor.u32 %v1440_v42, %v1168_v43  ;;  %v1446_v43 = vld [vmem:[%s2328_s0 + $0xb4] sm:$0xf] }
  0x31   :  { %565 = vmatmul.bf16.gmra.mxu0 %v1111_v44  ;;  %645 = vmatmul.bf16.gmra.mxu2 %v1239_v45  ;;  %v1474_v44 = vld [vmem:[%s2328_s0 + $0x194] sm:$0xf]  ;;  %v1304_v45 = vld [vmem:[%s2328_s0 + $0x198] sm:$0xf0] }
  0x32   :  { %v1307_v52 = vor.u32 %v1474_v44, %v1304_v45  ;;  %v1192_v44 = vld [vmem:[%s2328_s0 + $0xb8] sm:$0xf0] }
  0x3f   :  { %1395 = vmatmul.msk.bf16.gmra.mxu1 %vm448_vm2, %v1131_v50  ;;  %1412 = vmatmul.msk.bf16.gmra.mxu3 %vm448_vm2, %v1267_v55  ;;  %v1286_v50 = vld [vmem:[%s2328_s0 + $0x170] sm:$0xf] }
  0x40   :  { %v1287_v54 = vor.u32 %v1471_v51, %v1286_v50  ;;  %v1182_v50 = vld [vmem:[%s2328_s0 + $0xa0] sm:$0xf]  ;;  %v1445_v51 = vld [vmem:[%s2328_s0 + $0xa4] sm:$0xf0] }
  0x41   :  { %570 = vmatmul.bf16.gmra.mxu0 %v1119_v56  ;;  %650 = vmatmul.bf16.gmra.mxu2 %v1247_v57  ;;  %v1442_v57 = vld [vmem:[%s2328_s0 + $0x94] sm:$0xf] }
  0x42   :  { %v1179_v61 = vor.u32 %v1442_v57, %v1176_v58  ;;  %v1310_v57 = vld [vmem:[%s2328_s0 + $0x1a0] sm:$0xf]  ;;  %v1477_v58 = vld [vmem:[%s2328_s0 + $0x1a4] sm:$0xf0] }
  0x4f   :  { %1396 = vmatmul.msk.bf16.gmra.mxu1 %vm448_vm2, %v1139_v62  ;;  %1413 = vmatmul.msk.bf16.gmra.mxu3 %vm448_vm2, %v1275_v3  ;;  %v1166_v62 = vld [vmem:[%s2328_s0 + $0x80] sm:$0xf]  ;;  %v1473_v3 = vld [vmem:[%s2328_s0 + $0x184] sm:$0xf0] }
  0x50   :  { %v1295_v7 = vor.u32 %v1473_v3, %v1294_v2  ;;  %v1311_v3 = vor.u32 %v1477_v58, %v1310_v57  ;;  %v1484_v57 = vld [vmem:[%s2328_s0 + $0x1e4] sm:$0xf]  ;;  %v1344_v58 = vld [vmem:[%s2328_s0 + $0x1e8] sm:$0xf0] }
  0x51   :  { %575 = vmatmul.bf16.gmra.mxu0 %v1127_v4  ;;  %655 = vmatmul.bf16.gmra.mxu2 %v1255_v5  ;;  %v1315_v4 = vor.u32 %v1476_v59, %v1312_v60  ;;  %v1167_v5 = vor.u32 %v1441_v63, %v1166_v62  ;;  %v1183_v62 = vor.u32 %v1445_v51, %v1182_v50 }
  0x5f   :  { %1397 = vmatmul.msk.bf16.gmra.mxu1 %vm448_vm2, %v1147_v10  ;;  %1414 = vmatmul.msk.bf16.gmra.mxu3 %vm448_vm2, %v1283_v15 }
  0x61   :  { %580 = vmatmul.bf16.gmra.mxu0 %v1135_v16  ;;  %660 = vmatmul.bf16.gmra.mxu2 %v1263_v17  ;;  %v1444_v16 = vld [vmem:[%s2328_s0 + $0xa4] sm:$0xf]  ;;  %v1184_v17 = vld [vmem:[%s2328_s0 + $0xa8] sm:$0xf0] }
  0x62   :  { %v1187_v21 = vor.u32 %v1444_v16, %v1184_v17  ;;  %v1200_v17 = vld [vmem:[%s2328_s0 + $0xc8] sm:$0xf0] }
  0x6f   :  { %1398 = vmatmul.msk.bf16.gmra.mxu1 %vm448_vm2, %v1155_v22  ;;  %1415 = vmatmul.msk.bf16.gmra.mxu3 %vm448_vm2, %v1291_v27  ;;  %v1174_v22 = vld [vmem:[%s2328_s0 + $0x90] sm:$0xf] }
  0x70   :  { %v1175_v33 = vor.u32 %v1443_v23, %v1174_v22  ;;  %v1190_v23 = vld [vmem:[%s2328_s0 + $0xb0] sm:$0xf] }
  0x71   :  { %585 = vmatmul.bf16.gmra.mxu0 %v1143_v28  ;;  %665 = vmatmul.bf16.gmra.mxu2 %v1271_v29  ;;  %v1302_v28 = vld [vmem:[%s2328_s0 + $0x190] sm:$0xf]  ;;  %v1475_v29 = vld [vmem:[%s2328_s0 + $0x194] sm:$0xf0] }
  0x72   :  { %v1303_v35 = vor.u32 %v1475_v29, %v1302_v28 }
  0x7f   :  { %1399 = vmatmul.msk.bf16.gmra.mxu1 %vm448_vm2, %v1163_v34  ;;  %1416 = vmatmul.msk.bf16.gmra.mxu3 %vm448_vm2, %v1299_v39 }
  0x81   :  { %590 = vmatmul.bf16.gmra.mxu0 %v1151_v40  ;;  %670 = vmatmul.bf16.gmra.mxu2 %v1279_v41 }
  0x8c   :  { %v730_v49 = vpop.f32.mrf.mxu1 }
  0x8f   :  { %1400 = vmatmul.msk.bf16.gmra.mxu1 %vm448_vm2, %v1171_v46  ;;  %1417 = vmatmul.msk.bf16.gmra.mxu3 %vm448_vm2, %v1307_v52  ;;  %v1480_v46 = vld [vmem:[%s2328_s0 + $0x1c4] sm:$0xf] }
  0x90   :  { %v1331_v59 = vor.u32 %v1480_v46, %v1328_v47 }
  0x91   :  { %595 = vmatmul.bf16.gmra.mxu0 %v1159_v53  ;;  %675 = vmatmul.bf16.gmra.mxu2 %v1287_v54 }
  0x92   :  { %v2005_v55 = vpop.f32.mrf.mxu3 }
  0x94   :  { %v732_v56 = vpop.f32.mrf.mxu1 }
  0x9a   :  { %v2025_v0 = vpop.f32.mrf.mxu3 }
  0x9c   :  { %v735_v1 = vpop.f32.mrf.mxu1 }
  0x9e   :  { %v561_v6 = vpop.f32.mrf.mxu0 }
  0x9f   :  { %1401 = vmatmul.msk.bf16.gmra.mxu1 %vm448_vm2, %v1179_v61  ;;  %1418 = vmatmul.msk.bf16.gmra.mxu3 %vm448_vm2, %v1315_v4  ;;  %v562_v10 = vadd.f32 %v2037_v8, %v561_v6 }
  0xa1   :  { %600 = vmatmul.bf16.gmra.mxu0 %v1167_v5  ;;  %680 = vmatmul.bf16.gmra.mxu2 %v1295_v7  ;;  %v731_v14 = vadd.f32 %v730_v49, %v562_v10  ;;  %v1195_v49 = vor.u32 %v1446_v43, %v1192_v44 }
  0xa2   :  { %v2040_v9 = vpop.f32.mrf.mxu3 }
  0xa3   :  { %v890_v25 = vmax.f32 %v731_v14, 0.0 }
  0xa4   :  { %v737_v11 = vpop.f32.mrf.mxu1  ;;  %v2043_v12 = vpop.f32.mrf.mxu2 }
  0xa6   :  { %v563_v13 = vpop.f32.mrf.mxu0 }
  0xa7   :  { %v564_v15 = vadd.f32 %v2037_v8, %v563_v13 }
  0xa9   :  { %v733_v18 = vadd.f32 %v732_v56, %v564_v15 }
  0xaa   :  { %v2064_v24 = vpop.f32.mrf.mxu3 }
  0xab   :  { %v891_v26 = vmax.f32 %v733_v18, 0.0 }
  0xac   :  { %v740_v27 = vpop.f32.mrf.mxu1  ;;  %v2072_v32 = vpop.f32.mrf.mxu2 }
  0xad   :  { %v1500_v31 = vpack.c.bf16 %v891_v26, %v890_v25  ;;  %v1447_v25 = vld [vmem:[%s2328_s0 + $0xb4] sm:$0xf0] }
  0xae   :  { %v566_v34 = vpop.f32.mrf.mxu0 }
  0xaf   :  { %1402 = vmatmul.msk.bf16.gmra.mxu1 %vm448_vm2, %v1187_v21  ;;  %1501 = vst [vmem:[#allocation2] sm:$0xff] %v1500_v31   ;;  %1419 = vmatmul.msk.bf16.gmra.mxu3 %vm448_vm2, %v1323_v30  ;;  %v567_v37 = vadd.f32 %v2037_v8, %v566_v34  ;;  %v1318_v30 = vld [vmem:[%s2328_s0 + $0x1b0] sm:$0xf]  ;;  %v1479_v31 = vld [vmem:[%s2328_s0 + $0x1b4] sm:$0xf0] }
  0xb1   :  { %605 = vmatmul.bf16.gmra.mxu0 %v1175_v33  ;;  %685 = vmatmul.bf16.gmra.mxu2 %v1303_v35  ;;  %v736_v41 = vadd.f32 %v735_v1, %v567_v37  ;;  %v1339_v33 = vor.u32 %v1482_v19, %v1336_v20  ;;  %v1191_v37 = vor.u32 %v1447_v25, %v1190_v23 }
  0xb2   :  { %v2076_v36 = vpop.f32.mrf.mxu3 }
  0xb3   :  { %v892_v53 = vmax.f32 %v736_v41, 0.0  ;;  %v1319_v41 = vor.u32 %v1479_v31, %v1318_v30  ;;  %v1486_v30 = vld [vmem:[%s2328_s0 + $0x1f4] sm:$0xf]  ;;  %v1352_v31 = vld [vmem:[%s2328_s0 + $0x1f8] sm:$0xf0] }
  0xb4   :  { %v742_v38 = vpop.f32.mrf.mxu1  ;;  %v646_v39 = vpop.f32.mrf.mxu2 }
  0xb5   :  { %v647_v48 = vadd.f32 %v2037_v8, %v646_v39 }
  0xb6   :  { %v568_v40 = vpop.f32.mrf.mxu0 }
  0xb7   :  { %v569_v42 = vadd.f32 %v2037_v8, %v568_v40  ;;  %v816_v63 = vadd.f32 %v2005_v55, %v647_v48 }
  0xb9   :  { %v738_v45 = vadd.f32 %v737_v11, %v569_v42  ;;  %v924_v5 = vmax.f32 %v816_v63, 0.0 }
  0xba   :  { %v2099_v52 = vpop.f32.mrf.mxu3 }
  0xbb   :  { %v893_v54 = vmax.f32 %v738_v45, 0.0 }
  0xbc   :  { %v2101_v56 = vpop.f32.mrf.mxu1  ;;  %v648_v61 = vpop.f32.mrf.mxu2 }
  0xbd   :  { %v1505_v60 = vpack.c.bf16 %v893_v54, %v892_v53  ;;  %v649_v1 = vadd.f32 %v2037_v8, %v648_v61  ;;  %v1208_v53 = vld [vmem:[%s2328_s0 + $0xd8] sm:$0xf0]  ;;  %v1449_v61 = vld [vmem:[%s2328_s0 + $0xc4] sm:$0xf0] }
  0xbe   :  { %v571_v2 = vpop.f32.mrf.mxu0 }
  0xbf   :  { %1403 = vmatmul.msk.bf16.gmra.mxu1 %vm448_vm2, %v1195_v49  ;;  %1657 = vst [vmem:[#allocation2 + $0x8] sm:$0xff] %v1505_v60   ;;  %1420 = vmatmul.msk.bf16.gmra.mxu3 %vm448_vm2, %v1331_v59  ;;  %v818_v4 = vadd.f32 %v2025_v0, %v649_v1  ;;  %v572_v10 = vadd.f32 %v2037_v8, %v571_v2  ;;  %v1448_v0 = vld [vmem:[%s2328_s0 + $0xc4] sm:$0xf]  ;;  %v1198_v60 = vld [vmem:[%s2328_s0 + $0xc0] sm:$0xf] }
  0xc0   :  { %v1203_v22 = vor.u32 %v1448_v0, %v1200_v17 }
  0xc1   :  { %610 = vmatmul.bf16.gmra.mxu0 %v1183_v62  ;;  %v925_v6 = vmax.f32 %v818_v4, 0.0  ;;  %690 = vmatmul.bf16.gmra.mxu2 %v1311_v3  ;;  %v741_v15 = vadd.f32 %v740_v27, %v572_v10  ;;  %v1326_v3 = vld [vmem:[%s2328_s0 + $0x1c0] sm:$0xf]  ;;  %v1481_v4 = vld [vmem:[%s2328_s0 + $0x1c4] sm:$0xf0] }
  0xc2   :  { %v2114_v7 = vpop.f32.mrf.mxu3 }
  0xc3   :  { %v1585_v11 = vpack.c.bf16 %v925_v6, %v924_v5  ;;  %v894_v27 = vmax.f32 %v741_v15, 0.0  ;;  %v1347_v5 = vor.u32 %v1484_v57, %v1344_v58  ;;  %v1327_v15 = vor.u32 %v1481_v4, %v1326_v3 }
  0xc4   :  { %v747_v55 = vpop.f32.mrf.mxu1  ;;  %v651_v13 = vpop.f32.mrf.mxu2 }
  0xc5   :  { %1673 = vst [vmem:[#allocation2 + $0x88] sm:$0xff] %v1585_v11   ;;  %v652_v21 = vadd.f32 %v2037_v8, %v651_v13 }
  0xc6   :  { %v573_v14 = vpop.f32.mrf.mxu0 }
  0xc7   :  { %v574_v16 = vadd.f32 %v2037_v8, %v573_v14 }
  0xc9   :  { %v743_v18 = vadd.f32 %v742_v38, %v574_v16  ;;  %v821_v38 = vadd.f32 %v2040_v9, %v652_v21 }
  0xca   :  { %v2137_v26 = vpop.f32.mrf.mxu3 }
  0xcb   :  { %v895_v28 = vmax.f32 %v743_v18, 0.0  ;;  %v926_v43 = vmax.f32 %v821_v38, 0.0 }
  0xcc   :  { %v2139_v29 = vpop.f32.mrf.mxu1  ;;  %v653_v35 = vpop.f32.mrf.mxu2 }
  0xcd   :  { %v1510_v34 = vpack.c.bf16 %v895_v28, %v894_v27  ;;  %v654_v39 = vadd.f32 %v2037_v8, %v653_v35  ;;  %v1216_v27 = vld [vmem:[%s2328_s0 + $0xe8] sm:$0xf0]  ;;  %v1451_v35 = vld [vmem:[%s2328_s0 + $0xd4] sm:$0xf0] }
  0xce   :  { %v576_v40 = vpop.f32.mrf.mxu0 }
  0xcf   :  { %1404 = vmatmul.msk.bf16.gmra.mxu1 %vm448_vm2, %v1203_v22  ;;  %1658 = vst [vmem:[#allocation2 + $0x10] sm:$0xff] %v1510_v34   ;;  %1421 = vmatmul.msk.bf16.gmra.mxu3 %vm448_vm2, %v1339_v33  ;;  %v823_v42 = vadd.f32 %v2064_v24, %v654_v39  ;;  %v577_v46 = vadd.f32 %v2037_v8, %v576_v40  ;;  %v1450_v24 = vld [vmem:[%s2328_s0 + $0xd4] sm:$0xf]  ;;  %v1206_v34 = vld [vmem:[%s2328_s0 + $0xd0] sm:$0xf] }
  0xd0   :  { %v1211_v59 = vor.u32 %v1450_v24, %v1208_v53  ;;  %v1334_v40 = vld [vmem:[%s2328_s0 + $0x1d0] sm:$0xf] }
  0xd1   :  { %615 = vmatmul.bf16.gmra.mxu0 %v1191_v37  ;;  %v927_v44 = vmax.f32 %v823_v42, 0.0  ;;  %695 = vmatmul.bf16.gmra.mxu2 %v1319_v41  ;;  %v746_v50 = vadd.f32 %v2101_v56, %v577_v46  ;;  %v1483_v41 = vld [vmem:[%s2328_s0 + $0x1d4] sm:$0xf0] }
  0xd2   :  { %v2152_v45 = vpop.f32.mrf.mxu3 }
  0xd3   :  { %v1590_v47 = vpack.c.bf16 %v927_v44, %v926_v43  ;;  %v896_v63 = vmax.f32 %v746_v50, 0.0  ;;  %v1355_v43 = vor.u32 %v1486_v30, %v1352_v31  ;;  %v1335_v50 = vor.u32 %v1483_v41, %v1334_v40 }
  0xd4   :  { %v752_v9 = vpop.f32.mrf.mxu1  ;;  %v656_v48 = vpop.f32.mrf.mxu2 }
  0xd5   :  { %1674 = vst [vmem:[#allocation2 + $0x90] sm:$0xff] %v1590_v47   ;;  %v657_v56 = vadd.f32 %v2037_v8, %v656_v48 }
  0xd6   :  { %v578_v49 = vpop.f32.mrf.mxu0 }
  0xd7   :  { %v579_v51 = vadd.f32 %v2037_v8, %v578_v49  ;;  %v826_v11 = vadd.f32 %v2076_v36, %v657_v56 }
  0xd9   :  { %v748_v54 = vadd.f32 %v747_v55, %v579_v51  ;;  %v1199_v55 = vor.u32 %v1449_v61, %v1198_v60  ;;  %v928_v0 = vmax.f32 %v826_v11, 0.0  ;;  %v1342_v11 = vld [vmem:[%s2328_s0 + $0x1e0] sm:$0xf] }
  0xda   :  { %v2176_v62 = vpop.f32.mrf.mxu3 }
  0xdb   :  { %v897_v1 = vmax.f32 %v748_v54, 0.0 }
  0xdc   :  { %v2178_v2 = vpop.f32.mrf.mxu1  ;;  %v658_v10 = vpop.f32.mrf.mxu2 }
  0xdd   :  { %v1515_v6 = vpack.c.bf16 %v897_v1, %v896_v63  ;;  %v659_v13 = vadd.f32 %v2037_v8, %v658_v10  ;;  %v1224_v63 = vld [vmem:[%s2328_s0 + $0xf8] sm:$0xf0] }
  0xde   :  { %v581_v14 = vpop.f32.mrf.mxu0 }
  0xdf   :  { %1405 = vmatmul.msk.bf16.gmra.mxu1 %vm448_vm2, %v1211_v59  ;;  %1659 = vst [vmem:[#allocation2 + $0x18] sm:$0xff] %v1515_v6   ;;  %1422 = vmatmul.msk.bf16.gmra.mxu3 %vm448_vm2, %v1347_v5  ;;  %v828_v16 = vadd.f32 %v2099_v52, %v659_v13  ;;  %v582_v19 = vadd.f32 %v2037_v8, %v581_v14  ;;  %v1452_v52 = vld [vmem:[%s2328_s0 + $0xe4] sm:$0xf]  ;;  %v1214_v5 = vld [vmem:[%s2328_s0 + $0xe0] sm:$0xf] }
  0xe0   :  { %v1219_v33 = vor.u32 %v1452_v52, %v1216_v27  ;;  %v1485_v13 = vld [vmem:[%s2328_s0 + $0x1e4] sm:$0xf0] }
  0xe1   :  { %620 = vmatmul.bf16.gmra.mxu0 %v1199_v55  ;;  %v929_v17 = vmax.f32 %v828_v16, 0.0  ;;  %700 = vmatmul.bf16.gmra.mxu2 %v1327_v15  ;;  %v751_v23 = vadd.f32 %v2139_v29, %v582_v19 }
  0xe2   :  { %v2191_v18 = vpop.f32.mrf.mxu3 }
  0xe3   :  { %v1595_v20 = vpack.c.bf16 %v929_v17, %v928_v0  ;;  %v898_v37 = vmax.f32 %v751_v23, 0.0 }
  0xe4   :  { %v757_v36 = vpop.f32.mrf.mxu1  ;;  %v661_v21 = vpop.f32.mrf.mxu2 }
  0xe5   :  { %1675 = vst [vmem:[#allocation2 + $0x98] sm:$0xff] %v1595_v20   ;;  %v662_v29 = vadd.f32 %v2037_v8, %v661_v21 }
  0xe6   :  { %v583_v22 = vpop.f32.mrf.mxu0 }
  0xe7   :  { %v584_v25 = vadd.f32 %v2037_v8, %v583_v22  ;;  %v831_v47 = vadd.f32 %v2114_v7, %v662_v29  ;;  %v1456_v29 = vld [vmem:[%s2328_s0 + $0x104] sm:$0xf] }
  0xe9   :  { %v753_v28 = vadd.f32 %v752_v9, %v584_v25  ;;  %v1207_v9 = vor.u32 %v1451_v35, %v1206_v34  ;;  %v930_v24 = vmax.f32 %v831_v47, 0.0 }
  0xea   :  { %v2221_v42 = vpop.f32.mrf.mxu3 }
  0xeb   :  { %v899_v38 = vmax.f32 %v753_v28, 0.0 }
  0xec   :  { %v760_v39 = vpop.f32.mrf.mxu1  ;;  %v663_v46 = vpop.f32.mrf.mxu2 }
  0xed   :  { %v1520_v44 = vpack.c.bf16 %v899_v38, %v898_v37  ;;  %v664_v48 = vadd.f32 %v2037_v8, %v663_v46  ;;  %v1222_v38 = vld [vmem:[%s2328_s0 + $0xf0] sm:$0xf]  ;;  %v1487_v46 = vld [vmem:[%s2328_s0 + $0x1f4] sm:$0xf0] }
  0xee   :  { %v586_v49 = vpop.f32.mrf.mxu0 }
  0xef   :  { %1406 = vmatmul.msk.bf16.gmra.mxu1 %vm448_vm2, %v1219_v33  ;;  %1660 = vst [vmem:[#allocation2 + $0x20] sm:$0xff] %v1520_v44   ;;  %1423 = vmatmul.msk.bf16.gmra.mxu3 %vm448_vm2, %v1355_v43  ;;  %v833_v51 = vadd.f32 %v2137_v26, %v664_v48  ;;  %v587_v54 = vadd.f32 %v2037_v8, %v586_v49  ;;  %v1454_v26 = vld [vmem:[%s2328_s0 + $0xf4] sm:$0xf]  ;;  %v1350_v44 = vld [vmem:[%s2328_s0 + $0x1f0] sm:$0xf] }
  0xf0   :  { %v1227_v4 = vor.u32 %v1454_v26, %v1224_v63 }
  0xf1   :  { %625 = vmatmul.bf16.gmra.mxu0 %v1207_v9  ;;  %v931_v53 = vmax.f32 %v833_v51, 0.0  ;;  %705 = vmatmul.bf16.gmra.mxu2 %v1335_v50  ;;  %v756_v60 = vadd.f32 %v2178_v2, %v587_v54  ;;  %v1453_v2 = vld [vmem:[%s2328_s0 + $0xe4] sm:$0xf0] }
  0xf2   :  { %v2229_v56 = vpop.f32.mrf.mxu3  ;;  %v1215_v16 = vor.u32 %v1453_v2, %v1214_v5 }
  0xf3   :  { %v1600_v58 = vpack.c.bf16 %v931_v53, %v930_v24  ;;  %v900_v6 = vmax.f32 %v756_v60, 0.0  ;;  %v1351_v24 = vor.u32 %v1487_v46, %v1350_v44 }
  0xf4   :  { %v762_v57 = vpop.f32.mrf.mxu1  ;;  %v666_v7 = vpop.f32.mrf.mxu2 }
  0xf5   :  { %1676 = vst [vmem:[#allocation2 + $0xa0] sm:$0xff] %v1600_v58   ;;  %v667_v3 = vadd.f32 %v2037_v8, %v666_v7 }
  0xf6   :  { %v588_v59 = vpop.f32.mrf.mxu0 }
  0xf7   :  { %v589_v61 = vadd.f32 %v2037_v8, %v588_v59  ;;  %v836_v0 = vadd.f32 %v2152_v45, %v667_v3 }
  0xf9   :  { %v758_v1 = vadd.f32 %v757_v36, %v589_v61  ;;  %v1343_v36 = vor.u32 %v1485_v13, %v1342_v11  ;;  %v932_v22 = vmax.f32 %v836_v0, 0.0 }
  0xfa   :  { %v847_v20 = vpop.f32.mrf.mxu3 }
  0xfb   :  { %v901_v10 = vmax.f32 %v758_v1, 0.0 }
  0xfc   :  { %v765_v55 = vpop.f32.mrf.mxu1  ;;  %v668_v15 = vpop.f32.mrf.mxu2 }
  0xfd   :  { %v1525_v14 = vpack.c.bf16 %v901_v10, %v900_v6  ;;  %v669_v17 = vadd.f32 %v2037_v8, %v668_v15 }
  0xfe   :  { %v591_v19 = vpop.f32.mrf.mxu0 }
  0xff   :  { %1407 = vmatmul.msk.bf16.gmra.mxu1 %vm448_vm2, %v1227_v4  ;;  %1661 = vst [vmem:[#allocation2 + $0x28] sm:$0xff] %v1525_v14   ;;  %v838_v21 = vadd.f32 %v2176_v62, %v669_v17  ;;  %v592_v25 = vadd.f32 %v2037_v8, %v591_v19  ;;  %v1232_v62 = vld [vmem:[%s2328_s0 + $0x108] sm:$0xf0] }
 0x100   :  { %v1235_v37 = vor.u32 %v1456_v29, %v1232_v62 }
 0x101   :  { %630 = vmatmul.bf16.gmra.mxu0 %v1215_v16  ;;  %v933_v23 = vmax.f32 %v838_v21, 0.0  ;;  %710 = vmatmul.bf16.gmra.mxu2 %v1343_v36  ;;  %v761_v30 = vadd.f32 %v760_v39, %v592_v25  ;;  %v1455_v39 = vld [vmem:[%s2328_s0 + $0xf4] sm:$0xf0]  ;;  %s1730_s0 = smov [#allocation2]  }
 0x102   :  { %v2264_v34 = vpop.f32.mrf.mxu3  ;;  %v1223_v48 = vor.u32 %v1455_v39, %v1222_v38  ;;  %s1086_s7 = sshll.u32 %s1730_s0, 4  ;;  %s1087_s7 = int_to_ptr.vmem [resolvable:$true] %s1086_s7 }
 0x103   :  { %v1605_v27 = vpack.c.bf16 %v933_v23, %v932_v22  ;;  %v902_v40 = vmax.f32 %v761_v30, 0.0 }
 0x104   :  { %v767_v52 = vpop.f32.mrf.mxu1  ;;  %v671_v28 = vpop.f32.mrf.mxu2 }
 0x105   :  { %1677 = vst [vmem:[#allocation2 + $0xa8] sm:$0xff] %v1605_v27   ;;  %v672_v35 = vadd.f32 %v2037_v8, %v671_v28 }
 0x106   :  { %v593_v45 = vpop.f32.mrf.mxu0 }
 0x107   :  { %v594_v31 = vadd.f32 %v2037_v8, %v593_v45  ;;  %v841_v49 = vadd.f32 %v2191_v18, %v672_v35 }
 0x109   :  { %v763_v33 = vadd.f32 %v762_v57, %v594_v31  ;;  %v934_v54 = vmax.f32 %v841_v49, 0.0 }
 0x10a   :  { %v852_v59 = vpop.f32.mrf.mxu3 }
 0x10b   :  { %v903_v41 = vmax.f32 %v763_v33, 0.0 }
 0x10c   :  { %v770_v43 = vpop.f32.mrf.mxu1  ;;  %v673_v47 = vpop.f32.mrf.mxu2 }
 0x10d   :  { %v1530_v9 = vpack.c.bf16 %v903_v41, %v902_v40  ;;  %v674_v50 = vadd.f32 %v2037_v8, %v673_v47 }
 0x10e   :  { %v596_v51 = vpop.f32.mrf.mxu0 }
 0x10f   :  { %1408 = vmatmul.msk.bf16.gmra.mxu1 %vm448_vm2, %v1235_v37  ;;  %1662 = vst [vmem:[#allocation2 + $0x30] sm:$0xff] %v1530_v9   ;;  %v843_v53 = vadd.f32 %v2221_v42, %v674_v50  ;;  %v597_v58 = vadd.f32 %v2037_v8, %v596_v51 }
 0x111   :  { %635 = vmatmul.bf16.gmra.mxu0 %v1223_v48  ;;  %v935_v57 = vmax.f32 %v843_v53, 0.0  ;;  %715 = vmatmul.bf16.gmra.mxu2 %v1351_v24  ;;  %v766_v26 = vadd.f32 %v765_v55, %v597_v58 }
 0x112   :  { %v855_v10 = vpop.f32.mrf.mxu3 }
 0x113   :  { %v1610_v60 = vpack.c.bf16 %v935_v57, %v934_v54  ;;  %v904_v4 = vmax.f32 %v766_v26, 0.0 }
 0x114   :  { %v772_v7 = vpop.f32.mrf.mxu1  ;;  %v676_v61 = vpop.f32.mrf.mxu2 }
 0x115   :  { %1678 = vst [vmem:[#allocation2 + $0xb0] sm:$0xff] %v1610_v60   ;;  %v677_v3 = vadd.f32 %v2037_v8, %v676_v61 }
 0x116   :  { %v598_v18 = vpop.f32.mrf.mxu0 }
 0x117   :  { %v599_v63 = vadd.f32 %v2037_v8, %v598_v18  ;;  %v846_v11 = vadd.f32 %v2229_v56, %v677_v3 }
 0x119   :  { %v768_v1 = vadd.f32 %v767_v52, %v599_v63  ;;  %v936_v16 = vmax.f32 %v846_v11, 0.0 }
 0x11a   :  { %v857_v25 = vpop.f32.mrf.mxu3 }
 0x11b   :  { %v905_v42 = vmax.f32 %v768_v1, 0.0 }
 0x11c   :  { %v775_v5 = vpop.f32.mrf.mxu1  ;;  %v678_v6 = vpop.f32.mrf.mxu2 }
 0x11d   :  { %v1535_v2 = vpack.c.bf16 %v905_v42, %v904_v4  ;;  %v679_v13 = vadd.f32 %v2037_v8, %v678_v6 }
 0x11e   :  { %v601_v14 = vpop.f32.mrf.mxu0 }
 0x11f   :  { %1663 = vst [vmem:[#allocation2 + $0x38] sm:$0xff] %v1535_v2   ;;  %v848_v15 = vadd.f32 %v847_v20, %v679_v13  ;;  %v602_v0 = vadd.f32 %v2037_v8, %v601_v14 }
 0x121   :  { %v937_v55 = vmax.f32 %v848_v15, 0.0  ;;  %v771_v22 = vadd.f32 %v770_v43, %v602_v0 }
 0x122   :  { %v860_v35 = vpop.f32.mrf.mxu3 }
 0x123   :  { %v1615_v19 = vpack.c.bf16 %v937_v55, %v936_v16  ;;  %v906_v27 = vmax.f32 %v771_v22, 0.0 }
 0x124   :  { %v777_v17 = vpop.f32.mrf.mxu1  ;;  %v681_v36 = vpop.f32.mrf.mxu2 }
 0x125   :  { %1679 = vst [vmem:[#allocation2 + $0xb8] sm:$0xff] %v1615_v19   ;;  %v682_v56 = vadd.f32 %v2037_v8, %v681_v36 }
 0x126   :  { %v603_v21 = vpop.f32.mrf.mxu0 }
 0x127   :  { %v604_v23 = vadd.f32 %v2037_v8, %v603_v21  ;;  %v851_v31 = vadd.f32 %v2264_v34, %v682_v56 }
 0x129   :  { %v773_v52 = vadd.f32 %v772_v7, %v604_v23  ;;  %v938_v37 = vmax.f32 %v851_v31, 0.0 }
 0x12a   :  { %v862_v51 = vpop.f32.mrf.mxu3 }
 0x12b   :  { %v907_v28 = vmax.f32 %v773_v52, 0.0 }
 0x12c   :  { %v780_v45 = vpop.f32.mrf.mxu1  ;;  %v683_v30 = vpop.f32.mrf.mxu2 }
 0x12d   :  { %v1540_v20 = vpack.c.bf16 %v907_v28, %v906_v27  ;;  %v684_v29 = vadd.f32 %v2037_v8, %v683_v30 }
 0x12e   :  { %v606_v62 = vpop.f32.mrf.mxu0 }
 0x12f   :  { %1664 = vst [vmem:[#allocation2 + $0x40] sm:$0xff] %v1540_v20   ;;  %v853_v33 = vadd.f32 %v852_v59, %v684_v29  ;;  %v607_v39 = vadd.f32 %v2037_v8, %v606_v62 }
 0x131   :  { %v939_v38 = vmax.f32 %v853_v33, 0.0  ;;  %v776_v46 = vadd.f32 %v775_v5, %v607_v39 }
 0x132   :  { %v865_v1 = vpop.f32.mrf.mxu3 }
 0x133   :  { %v1620_v41 = vpack.c.bf16 %v939_v38, %v938_v37  ;;  %v908_v48 = vmax.f32 %v776_v46, 0.0 }
 0x134   :  { %v782_v40 = vpop.f32.mrf.mxu1  ;;  %v686_v43 = vpop.f32.mrf.mxu2 }
 0x135   :  { %1680 = vst [vmem:[#allocation2 + $0xc0] sm:$0xff] %v1620_v41   ;;  %v687_v34 = vadd.f32 %v2037_v8, %v686_v43 }
 0x136   :  { %v608_v44 = vpop.f32.mrf.mxu0 }
 0x137   :  { %v609_v9 = vadd.f32 %v2037_v8, %v608_v44  ;;  %v856_v54 = vadd.f32 %v855_v10, %v687_v34 }
 0x139   :  { %v778_v47 = vadd.f32 %v777_v17, %v609_v9  ;;  %v940_v59 = vmax.f32 %v856_v54, 0.0 }
 0x13a   :  { %v867_v0 = vpop.f32.mrf.mxu3 }
 0x13b   :  { %v909_v49 = vmax.f32 %v778_v47, 0.0 }
 0x13c   :  { %v785_v50 = vpop.f32.mrf.mxu1  ;;  %v688_v53 = vpop.f32.mrf.mxu2 }
 0x13d   :  { %v1545_v24 = vpack.c.bf16 %v909_v49, %v908_v48  ;;  %v689_v57 = vadd.f32 %v2037_v8, %v688_v53 }
 0x13e   :  { %v611_v58 = vpop.f32.mrf.mxu0 }
 0x13f   :  { %1665 = vst [vmem:[#allocation2 + $0x48] sm:$0xff] %v1545_v24   ;;  %v858_v7 = vadd.f32 %v857_v25, %v689_v57  ;;  %v612_v61 = vadd.f32 %v2037_v8, %v611_v58 }
 0x141   :  { %v941_v60 = vmax.f32 %v858_v7, 0.0  ;;  %v781_v4 = vadd.f32 %v780_v45, %v612_v61 }
 0x142   :  { %v870_v45 = vpop.f32.mrf.mxu3 }
 0x143   :  { %v1625_v26 = vpack.c.bf16 %v941_v60, %v940_v59  ;;  %v910_v6 = vmax.f32 %v781_v4, 0.0 }
 0x144   :  { %v787_v18 = vpop.f32.mrf.mxu1  ;;  %v691_v63 = vpop.f32.mrf.mxu2 }
 0x145   :  { %1681 = vst [vmem:[#allocation2 + $0xc8] sm:$0xff] %v1625_v26   ;;  %v692_v2 = vadd.f32 %v2037_v8, %v691_v63 }
 0x146   :  { %v613_v3 = vpop.f32.mrf.mxu0 }
 0x147   :  { %v614_v42 = vadd.f32 %v2037_v8, %v613_v3  ;;  %v861_v15 = vadd.f32 %v860_v35, %v692_v2 }
 0x149   :  { %v783_v5 = vadd.f32 %v782_v40, %v614_v42  ;;  %v942_v19 = vmax.f32 %v861_v15, 0.0 }
 0x14a   :  { %v872_v46 = vpop.f32.mrf.mxu3 }
 0x14b   :  { %v911_v10 = vmax.f32 %v783_v5, 0.0 }
 0x14c   :  { %v790_v11 = vpop.f32.mrf.mxu1  ;;  %v693_v14 = vpop.f32.mrf.mxu2 }
 0x14d   :  { %v1550_v13 = vpack.c.bf16 %v911_v10, %v910_v6  ;;  %v694_v16 = vadd.f32 %v2037_v8, %v693_v14 }
 0x14e   :  { %v616_v55 = vpop.f32.mrf.mxu0 }
 0x14f   :  { %1666 = vst [vmem:[#allocation2 + $0x50] sm:$0xff] %v1550_v13   ;;  %v863_v17 = vadd.f32 %v862_v51, %v694_v16  ;;  %v617_v21 = vadd.f32 %v2037_v8, %v616_v55 }
 0x151   :  { %v943_v36 = vmax.f32 %v863_v17, 0.0  ;;  %v786_v56 = vadd.f32 %v785_v50, %v617_v21 }
 0x152   :  { %v875_v7 = vpop.f32.mrf.mxu3 }
 0x153   :  { %v1630_v23 = vpack.c.bf16 %v943_v36, %v942_v19  ;;  %v912_v30 = vmax.f32 %v786_v56, 0.0 }
 0x154   :  { %v792_v22 = vpop.f32.mrf.mxu1  ;;  %v696_v25 = vpop.f32.mrf.mxu2 }
 0x155   :  { %1682 = vst [vmem:[#allocation2 + $0xd0] sm:$0xff] %v1630_v23   ;;  %v697_v20 = vadd.f32 %v2037_v8, %v696_v25 }
 0x156   :  { %v618_v52 = vpop.f32.mrf.mxu0 }
 0x157   :  { %v619_v27 = vadd.f32 %v2037_v8, %v618_v52  ;;  %v866_v35 = vadd.f32 %v865_v1, %v697_v20 }
 0x159   :  { %v788_v28 = vadd.f32 %v787_v18, %v619_v27  ;;  %v944_v40 = vmax.f32 %v866_v35, 0.0 }
 0x15a   :  { %v877_v10 = vpop.f32.mrf.mxu3 }
 0x15b   :  { %v913_v31 = vmax.f32 %v788_v28, 0.0 }
 0x15c   :  { %v795_v29 = vpop.f32.mrf.mxu1  ;;  %v698_v33 = vpop.f32.mrf.mxu2 }
 0x15d   :  { %v1555_v62 = vpack.c.bf16 %v913_v31, %v912_v30  ;;  %v699_v37 = vadd.f32 %v2037_v8, %v698_v33 }
 0x15e   :  { %v621_v38 = vpop.f32.mrf.mxu0 }
 0x15f   :  { %1667 = vst [vmem:[#allocation2 + $0x58] sm:$0xff] %v1555_v62   ;;  %v868_v39 = vadd.f32 %v867_v0, %v699_v37  ;;  %v622_v43 = vadd.f32 %v2037_v8, %v621_v38 }
 0x161   :  { %v945_v41 = vmax.f32 %v868_v39, 0.0  ;;  %v791_v48 = vadd.f32 %v790_v11, %v622_v43 }
 0x163   :  { %v1635_v9 = vpack.c.bf16 %v945_v41, %v944_v40  ;;  %v914_v24 = vmax.f32 %v791_v48, 0.0 }
 0x164   :  { %v797_v44 = vpop.f32.mrf.mxu1  ;;  %v701_v47 = vpop.f32.mrf.mxu2 }
 0x165   :  { %1683 = vst [vmem:[#allocation2 + $0xd8] sm:$0xff] %v1635_v9   ;;  %v702_v51 = vadd.f32 %v2037_v8, %v701_v47  ;;  %v644_v9 = vadd.f32 %v2037_v8, %v2072_v32 }
 0x166   :  { %v623_v34 = vpop.f32.mrf.mxu0 }
 0x167   :  { %v624_v49 = vadd.f32 %v2037_v8, %v623_v34  ;;  %v871_v59 = vadd.f32 %v870_v45, %v702_v51 }
 0x169   :  { %v793_v50 = vadd.f32 %v792_v22, %v624_v49  ;;  %v946_v26 = vmax.f32 %v871_v59, 0.0  ;;  %v880_v22 = vpop.f32.mrf.mxu3 }
 0x16b   :  { %v915_v53 = vmax.f32 %v793_v50, 0.0 }
 0x16c   :  { %v800_v54 = vpop.f32.mrf.mxu1  ;;  %v703_v58 = vpop.f32.mrf.mxu2 }
 0x16d   :  { %v1560_v57 = vpack.c.bf16 %v915_v53, %v914_v24  ;;  %v704_v60 = vadd.f32 %v2037_v8, %v703_v58 }
 0x16e   :  { %v626_v61 = vpop.f32.mrf.mxu0 }
 0x16f   :  { %1668 = vst [vmem:[#allocation2 + $0x60] sm:$0xff] %v1560_v57   ;;  %v873_v18 = vadd.f32 %v872_v46, %v704_v60  ;;  %v627_v1 = vadd.f32 %v2037_v8, %v626_v61 }
 0x171   :  { %v947_v63 = vmax.f32 %v873_v18, 0.0  ;;  %v796_v2 = vadd.f32 %v795_v29, %v627_v1  ;;  %v882_v35 = vpop.f32.mrf.mxu3 }
 0x173   :  { %v1640_v4 = vpack.c.bf16 %v947_v63, %v946_v26  ;;  %v916_v14 = vmax.f32 %v796_v2, 0.0 }
 0x174   :  { %v802_v3 = vpop.f32.mrf.mxu1  ;;  %v706_v42 = vpop.f32.mrf.mxu2 }
 0x175   :  { %1684 = vst [vmem:[#allocation2 + $0xe0] sm:$0xff] %v1640_v4   ;;  %v707_v13 = vadd.f32 %v2037_v8, %v706_v42 }
 0x176   :  { %v628_v5 = vpop.f32.mrf.mxu0 }
 0x177   :  { %v629_v6 = vadd.f32 %v2037_v8, %v628_v5  ;;  %v876_v17 = vadd.f32 %v875_v7, %v707_v13 }
 0x179   :  { %v798_v11 = vadd.f32 %v797_v44, %v629_v6  ;;  %v948_v23 = vmax.f32 %v876_v17, 0.0  ;;  %v642_v44 = vadd.f32 %v2037_v8, %v2043_v12  ;;  %v885_v53 = vpop.f32.mrf.mxu3 }
 0x17b   :  { %v917_v15 = vmax.f32 %v798_v11, 0.0 }
 0x17c   :  { %v805_v16 = vpop.f32.mrf.mxu1  ;;  %v708_v0 = vpop.f32.mrf.mxu2 }
 0x17d   :  { %v1565_v55 = vpack.c.bf16 %v917_v15, %v916_v14  ;;  %v709_v19 = vadd.f32 %v2037_v8, %v708_v0 }
 0x17e   :  { %v631_v36 = vpop.f32.mrf.mxu0 }
 0x17f   :  { %1669 = vst [vmem:[#allocation2 + $0x68] sm:$0xff] %v1565_v55   ;;  %v878_v21 = vadd.f32 %v877_v10, %v709_v19  ;;  %v632_v52 = vadd.f32 %v2037_v8, %v631_v36 }
 0x181   :  { %v949_v25 = vmax.f32 %v878_v21, 0.0  ;;  %v801_v20 = vadd.f32 %v800_v54, %v632_v52  ;;  %v887_v42 = vpop.f32.mrf.mxu3 }
 0x183   :  { %v1645_v27 = vpack.c.bf16 %v949_v25, %v948_v23  ;;  %v918_v62 = vmax.f32 %v801_v20, 0.0 }
 0x184   :  { %v807_v56 = vpop.f32.mrf.mxu1  ;;  %v711_v28 = vpop.f32.mrf.mxu2 }
 0x185   :  { %1685 = vst [vmem:[#allocation2 + $0xe8] sm:$0xff] %v1645_v27   ;;  %v712_v29 = vadd.f32 %v2037_v8, %v711_v28 }
 0x186   :  { %v633_v45 = vpop.f32.mrf.mxu0 }
 0x187   :  { %v634_v30 = vadd.f32 %v2037_v8, %v633_v45  ;;  %v881_v40 = vadd.f32 %v880_v22, %v712_v29 }
 0x189   :  { %v803_v31 = vadd.f32 %v802_v3, %v634_v30  ;;  %v950_v47 = vmax.f32 %v881_v40, 0.0 }
 0x18b   :  { %v919_v33 = vmax.f32 %v803_v31, 0.0 }
 0x18c   :  { %v810_v37 = vpop.f32.mrf.mxu1  ;;  %v713_v39 = vpop.f32.mrf.mxu2 }
 0x18d   :  { %v1570_v38 = vpack.c.bf16 %v919_v33, %v918_v62  ;;  %v714_v41 = vadd.f32 %v2037_v8, %v713_v39  ;;  %v811_v34 = vadd.f32 %v810_v37, %v642_v44 }
 0x18e   :  { %v636_v43 = vpop.f32.mrf.mxu0 }
 0x18f   :  { %1670 = vst [vmem:[#allocation2 + $0x70] sm:$0xff] %v1570_v38   ;;  %v883_v46 = vadd.f32 %v882_v35, %v714_v41  ;;  %v637_v49 = vadd.f32 %v2037_v8, %v636_v43  ;;  %v922_v57 = vmax.f32 %v811_v34, 0.0 }
 0x191   :  { %v951_v48 = vmax.f32 %v883_v46, 0.0  ;;  %v806_v59 = vadd.f32 %v805_v16, %v637_v49 }
 0x193   :  { %v1650_v51 = vpack.c.bf16 %v951_v48, %v950_v47  ;;  %v920_v18 = vmax.f32 %v806_v59, 0.0 }
 0x194   :  { %v812_v50 = vpop.f32.mrf.mxu1  ;;  %v716_v54 = vpop.f32.mrf.mxu2 }
 0x195   :  { %v813_v24 = vadd.f32 %v812_v50, %v644_v9  ;;  %1686 = vst [vmem:[#allocation2 + $0xf0] sm:$0xff] %v1650_v51   ;;  %v717_v32 = vadd.f32 %v2037_v8, %v716_v54 }
 0x196   :  { %v638_v7 = vpop.f32.mrf.mxu0 }
 0x197   :  { %v923_v58 = vmax.f32 %v813_v24, 0.0  ;;  %v639_v12 = vadd.f32 %v2037_v8, %v638_v7  ;;  %v886_v3 = vadd.f32 %v885_v53, %v717_v32 }
 0x199   :  { %v1580_v60 = vpack.c.bf16 %v923_v58, %v922_v57  ;;  %v808_v61 = vadd.f32 %v807_v56, %v639_v12  ;;  %v952_v2 = vmax.f32 %v886_v3, 0.0 }
 0x19b   :  { %1672 = vst [vmem:[#allocation2 + $0x80] sm:$0xff] %v1580_v60   ;;  %v921_v26 = vmax.f32 %v808_v61, 0.0 }
 0x19c   :  { %v718_v1 = vpop.f32.mrf.mxu2 }
 0x19d   :  { %v1575_v63 = vpack.c.bf16 %v921_v26, %v920_v18  ;;  %v719_v4 = vadd.f32 %v2037_v8, %v718_v1 }
 0x19f   :  { %1671 = vst [vmem:[#allocation2 + $0x78] sm:$0xff] %v1575_v63   ;;  %v888_v5 = vadd.f32 %v887_v42, %v719_v4 }
 0x1a1   :  { %v953_v6 = vmax.f32 %v888_v5, 0.0 }
 0x1a3   :  { %v1655_v10 = vpack.c.bf16 %v953_v6, %v952_v2 }
 0x1a5   :  { %1687 = vst [vmem:[#allocation2 + $0xf8] sm:$0xff] %v1655_v10  }
 0x1a6   :  { %1094 = dma.vmem_to_hbm [thread:$0]  %s1087_s7, 4096, %s1089_s10, [#allocation3], %s1731_s11, %s1731_s11, %s1732_s12  }
 0x1a7   :  { %1727 = dma.done.wait [#allocation3], 4096  }
 0x1a8   :  { %1728 = vsyncadd [#allocation3], 4294963200 }
 0x1a9   :  { %1099 = vsyncpa [#allocation3], 1 }

</bundles_post_ra>
